<compile_context>
chip_gen: v7x
topology: tpu7x:2x2x1
jax: 0.10.0
libtpu: 0.0.40
codegen_flags: <defaults>
</compile_context>

<pallas_src>
import math

import jax
import jax.numpy as jnp
from jax.experimental import pallas as pl
from jax.experimental.pallas import tpu as pltpu


def _normalize_kernel(x_ref, scale_ref, bias_ref, o_ref):
    # x_ref, o_ref        : VMEM (R_tile, L)
    # scale_ref, bias_ref : VMEM (R_tile, 1) f32, lane-broadcast in-register
    x = x_ref[...].astype(jnp.float32)
    o_ref[...] = (x * scale_ref[...] + bias_ref[...]).astype(o_ref.dtype)


def _sublane_quantum(*dtypes) -> int:
    """Sublane multiple that keeps blocks layout-dense for every dtype used."""
    q = 8
    for dt in dtypes:
        q = max(q, 8 * (4 // max(jnp.dtype(dt).itemsize, 1)))  # f32:8 bf16:16 i8:32
    return q


def _pick_row_tile(rows: int, row_bytes: int, quantum: int) -> int:
    """Rows per block for the dense (rows, 128) layout.

    * multiple of `quantum` -> no sublane-padding inflation for any dtype used
    * block <= 2 MiB        -> in+out double buffers (~8 MiB f32) fit v5e's
                               16 MiB default scoped VMEM; trivially v6e/v7x
    * prefer >= 2 grid steps (pipelining + v7x 2-TensorCore sharding) but never
      shrink blocks below 256 KiB, where per-step overhead starts to dominate.
    """
    MAX_BLOCK = 2 * 1024 * 1024
    MIN_BLOCK = 256 * 1024
    cap = max(quantum, (MAX_BLOCK // row_bytes) // quantum * quantum)
    tr = min(cap, rows)
    for n_target in (2, 4, 8):
        per = -(-rows // n_target)                 # ceil(rows / n_target)
        per = -(-per // quantum) * quantum         # round up to sublane quantum
        if per * row_bytes >= MIN_BLOCK and per < tr:
            tr = per
    # If one block covers everything, use the exact row count (full-extent
    # block dims are always legal, even if not a multiple of the quantum).
    return rows if tr >= rows else tr


def normalize_cls(x, mean, std, out_dtype=None):
    """(x - mean[c]) / std[c] over the channel axis of a (..., C, H, W) tensor.

    Matches NormalizeCls.forward; mean/std are length-C vectors.  scale/bias
    are precomputed and kept in f32 regardless of x/out dtype.
    """
    mean = jnp.asarray(mean, jnp.float32)
    std = jnp.asarray(std, jnp.float32)
    *lead, C, H, W = x.shape
    assert mean.shape == (C,) and std.shape == (C,)
    out_dtype = x.dtype if out_dtype is None else jnp.dtype(out_dtype)
    B = math.prod(lead) if lead else 1
    hw = H * W
    in_isz = jnp.dtype(x.dtype).itemsize
    out_isz = jnp.dtype(out_dtype).itemsize

    scale_c = 1.0 / std                      # exact f32 reciprocal
    bias_c = -mean / std

    if hw % 128 == 0:
        # ---- dense path: (rows, 128) view, sublane- and lane-dense blocks ----
        lane = 128
        rpc = hw // lane                     # 128-wide rows per channel plane
        rows = B * C * rpc
        x2 = x.reshape(rows, lane)           # free layout plumbing (contiguous)
        scale_r = jnp.tile(jnp.repeat(scale_c, rpc), B).reshape(rows, 1)
        bias_r = jnp.tile(jnp.repeat(bias_c, rpc), B).reshape(rows, 1)

        quantum = _sublane_quantum(x.dtype, out_dtype)
        tr = _pick_row_tile(rows, lane * max(in_isz, out_isz), quantum)
        grid = (pl.cdiv(rows, tr),)
        x_spec = pl.BlockSpec((tr, lane), lambda i: (i, 0))
        sb_spec = pl.BlockSpec((tr, 1), lambda i: (i, 0))
        out_spec = pl.BlockSpec((tr, lane), lambda i: (i, 0))
    else:
        # ---- fallback: (B*C, hw) layout, bounded lane tiles, masked tail ----
        # TODO(synk): sublane-padded when B*C < 8; only hit for hw % 128 != 0.
        rows = B * C
        x2 = x.reshape(rows, hw)
        scale_r = jnp.tile(scale_c, B).reshape(rows, 1)
        bias_r = jnp.tile(bias_c, B).reshape(rows, 1)

        rows_pad = -(-rows // 8) * 8                       # budget padded sublanes
        max_block = 2 * 1024 * 1024
        if hw < 128:
            lane_tile = hw                                 # full lane extent
        else:
            cap_lanes = max(1, max_block // (rows_pad * max(in_isz, out_isz)) // 128)
            lane_tile = min(cap_lanes, hw // 128) * 128
        grid = (pl.cdiv(hw, lane_tile),)
        x_spec = pl.BlockSpec((rows, lane_tile), lambda i: (0, i))
        sb_spec = pl.BlockSpec((rows, 1), lambda i: (0, 0))
        out_spec = pl.BlockSpec((rows, lane_tile), lambda i: (0, i))

    # Optional knob (left off for robustness): pipeline_mode=pl.Buffered(3) on
    # x_spec can help when tiles end up small; sweep 2 vs 3 on real shapes.
    out2 = pl.pallas_call(
        _normalize_kernel,
        out_shape=jax.ShapeDtypeStruct(x2.shape, out_dtype),
        grid=grid,
        in_specs=[x_spec, sb_spec, sb_spec],
        out_specs=out_spec,
        compiler_params=pltpu.CompilerParams(
            dimension_semantics=("parallel",),
        ),
        cost_estimate=pl.CostEstimate(
            flops=2 * B * C * hw,
            transcendentals=0,
            bytes_accessed=B * C * hw * (in_isz + out_isz) + 2 * rows * 4,
        ),
    )(x2, scale_r, bias_r)

    return out2.reshape(x.shape)


if __name__ == "__main__":
    key = jax.random.PRNGKey(0)

    # Module-style params (what __init__ would hold) and a small (C, H, W) input.
    C, H, W = 4, 16, 16
    mean = jnp.array([0.485, 0.456, 0.406, 0.5], dtype=jnp.float32)
    std = jnp.array([0.229, 0.224, 0.225, 0.25], dtype=jnp.float32)
    x = jax.random.normal(key, (C, H, W), dtype=jnp.float32)

    out = jax.block_until_ready(normalize_cls(x, mean, std))
    ref = (x - mean.reshape(C, 1, 1)) / std.reshape(C, 1, 1)
    assert out.shape == x.shape and out.dtype == x.dtype
    assert jnp.allclose(out, ref, rtol=1e-5, atol=1e-5), "mismatch (C,H,W)"

    # Batched input (torch broadcasting allows (N, C, H, W) too) — dense path.
    mean3, std3 = mean[:3], std[:3]
    xb = jax.random.normal(jax.random.PRNGKey(1), (2, 3, 16, 16), dtype=jnp.float32)
    outb = jax.block_until_ready(normalize_cls(xb, mean3, std3))
    refb = (xb - mean3.reshape(3, 1, 1)) / std3.reshape(3, 1, 1)
    assert jnp.allclose(outb, refb, rtol=1e-5, atol=1e-5), "mismatch batched"

    # Non-multiple-of-128 plane -> bounded fallback path with masked lane tail.
    xo = jax.random.normal(jax.random.PRNGKey(2), (3, 7, 20), dtype=jnp.float32)
    outo = jax.block_until_ready(normalize_cls(xo, mean3, std3))
    refo = (xo - mean3.reshape(3, 1, 1)) / std3.reshape(3, 1, 1)
    assert jnp.allclose(outo, refo, rtol=1e-5, atol=1e-5), "mismatch fallback"

    # bf16 output option (halves write bytes for the usual pre-conv consumer).
    outh = jax.block_until_ready(normalize_cls(x, mean, std, out_dtype=jnp.bfloat16))
    assert outh.dtype == jnp.bfloat16
    assert jnp.allclose(outh.astype(jnp.float32), ref, rtol=2e-2, atol=2e-2), "mismatch bf16"

    print("KERNEL_OK")
</pallas_src>

<mosaic_0001>
module attributes {stable_mosaic.version = 11 : i64} {
  func.func @_normalize_kernel(%arg0: i32, %arg1: memref<8x128xf32, #tpu.memory_space<vmem>>, %arg2: memref<8x1xf32, #tpu.memory_space<vmem>>, %arg3: memref<8x1xf32, #tpu.memory_space<vmem>>, %arg4: memref<8x128xf32, #tpu.memory_space<vmem>>) attributes {dimension_semantics = [#tpu.dimension_semantics<parallel>], iteration_bounds = array<i64: 1>, scalar_prefetch = 0 : i64, scratch_operands = 0 : i64, tpu.core_type = #tpu.core_type<tc>, window_params = [{transform_indices = @transform_0, window_bounds = array<i64: 8, 128>}, {transform_indices = @transform_1, window_bounds = array<i64: 8, 1>}, {transform_indices = @transform_2, window_bounds = array<i64: 8, 1>}, {transform_indices = @transform_3, window_bounds = array<i64: 8, 128>}]} {
    %c0 = arith.constant 0 : index
    %c0_0 = arith.constant 0 : index
    %0 = vector.load %arg1[%c0, %c0_0] : memref<8x128xf32, #tpu.memory_space<vmem>>, vector<8x128xf32>
    %c0_1 = arith.constant 0 : index
    %c0_2 = arith.constant 0 : index
    %1 = vector.load %arg2[%c0_1, %c0_2] : memref<8x1xf32, #tpu.memory_space<vmem>>, vector<8x1xf32>
    %2 = vector.broadcast %1 : vector<8x1xf32> to vector<8x128xf32>
    %3 = arith.mulf %0, %2 : vector<8x128xf32>
    %c0_3 = arith.constant 0 : index
    %c0_4 = arith.constant 0 : index
    %4 = vector.load %arg3[%c0_3, %c0_4] : memref<8x1xf32, #tpu.memory_space<vmem>>, vector<8x1xf32>
    %5 = vector.broadcast %4 : vector<8x1xf32> to vector<8x128xf32>
    %6 = arith.addf %3, %5 : vector<8x128xf32>
    %c0_5 = arith.constant 0 : index
    %c0_6 = arith.constant 0 : index
    %7 = vector.load %arg4[%c0_5, %c0_6] : memref<8x128xf32, #tpu.memory_space<vmem>>, vector<8x128xf32>
    tpu.vector_store %arg4[%c0_5, %c0_6], %6 {strides = array<i32>} : memref<8x128xf32, #tpu.memory_space<vmem>>, vector<8x128xf32>,
    return
  }
  func.func @transform_0(%arg0: i32) -> (i32, i32) {
    %c0_i32 = arith.constant 0 : i32
    %c0_i32_0 = arith.constant 0 : i32
    return %arg0, %c0_i32 : i32, i32
  }
  func.func @transform_1(%arg0: i32) -> (i32, i32) {
    %c0_i32 = arith.constant 0 : i32
    %c0_i32_0 = arith.constant 0 : i32
    return %arg0, %c0_i32 : i32, i32
  }
  func.func @transform_2(%arg0: i32) -> (i32, i32) {
    %c0_i32 = arith.constant 0 : i32
    %c0_i32_0 = arith.constant 0 : i32
    return %arg0, %c0_i32 : i32, i32
  }
  func.func @transform_3(%arg0: i32) -> (i32, i32) {
    %c0_i32 = arith.constant 0 : i32
    %c0_i32_0 = arith.constant 0 : i32
    return %arg0, %c0_i32 : i32, i32
  }
}

</mosaic_0001>

<bundles_post_ra>
// kernel: tpu_custom_call.1
= control target key start
LH: loop header
LB: loop body
LE: loop exit
PB: predicated region body
PF: predicated region fallthrough
CT: control target
= control target key end

     0   :  { %s115_s0 = inlined_call_operand.vmem [shape: f32[8,128], index: 0, kind: input, shape index: {}]   ;;  %s116_s1 = inlined_call_operand.vmem [shape: f32[8,1], index: 1, kind: input, shape index: {}]   ;;  %s117_s2 = inlined_call_operand.vmem [shape: f32[8,1], index: 2, kind: input, shape index: {}]   ;;  %s118_s3 = inlined_call_operand.hbm [shape: f32[8,128], index: 3, kind: output, shape index: {}]  }
   0x1   :  { %v16_v0 = vld [vmem:[%s116_s1] sm:$0xff] }
   0x2   :  { %8 = vsyncpa [#allocation3], 0  ;;  %v72_v1 = vmov 0   ;;  %v23_v2 = vld [vmem:[%s117_s2] sm:$0xff]  ;;  %s73_s18 = smov [#allocation2]  }
   0x3   :  { %47 = vset.pattern.permute.xlu0 %v72_v1  ;;  %v15_v4 = vld [vmem:[%s115_s0] sm:$0xff]  ;;  %s37_s19 = sshll.u32 %s73_s18, 4  ;;  %s38_s19 = int_to_ptr.vmem [resolvable:$true] %s37_s19 }
   0x4   :  { %19 = vperm.xlu0 %47, %v16_v0   ;;  %s48_s1 = scalar_lea.vmem %s38_s19, 128  ;;  %p53_p1 = scmp.lt.s32.totalorder %s38_s19, %s38_s19 }
   0x5   :  { %p49_p0 = scmp.ne.s32.totalorder %s38_s19, %s48_s1  ;;  %p54_p2 = scmp.lt.s32.totalorder %s48_s1, %s48_s1 }
   0x7   :  { %p55_p3 = por %p54_p2, %p53_p1 }
   0x8   :  { %26 = vperm.xlu0 %47, %v23_v2  }
   0x9   :  { %p56_p4 = pnand %p55_p3, %p49_p0 }
  0x83   :  { %v20_v3 = vpop.permute.xlu0 %19 }
  0x84   :  { %v22_v5 = vmul.f32 %v20_v3, %v15_v4 }
  0x87   :  { %v27_v6 = vpop.permute.xlu0 %26 }
  0x88   :  { %v29_v7 = vadd.f32 %v27_v6, %v22_v5 }
  0x8a   :  { %30 = vst [vmem:[#allocation2] sm:$0xff] %v29_v7 }
  0x8b   :  { %59 = shalt.err (!%p56_p4)
}
  0x8c   :  { %s60_s21 = scalar_lea.hbm %s118_s3, 128 }
  0x8d   :  { %p61_p5 = scmp.ne.s32.totalorder %s118_s3, %s60_s21  ;;  %p64_p6 = scmp.lt.u32.totalorder %s60_s21, %s118_s3 }
  0x8f   :  { %p66_p7 = pnand %p64_p6, %p61_p5 }
  0x91   :  { %69 = shalt.err (!%p66_p7)
}
  0x92   :  { %40 = dma.vmem_to_hbm [thread:$0]  %s38_s19, 128, %s118_s3, [#allocation3]  }
  0x93   :  { %70 = dma.done.wait [#allocation3], 128  }
  0x94   :  { %71 = vsyncadd [#allocation3], 4294967168 }
  0x95   :  { %44 = vsyncpa [#allocation3], 1 }

</bundles_post_ra>
